<compile_context>
chip_gen: v6e
topology: v6e:2x2x1
jax: 0.10.0
libtpu: 0.0.40
codegen_flags: <defaults>
</compile_context>

<pallas_src>
import functools

import jax
import jax.numpy as jnp
from jax import lax
from jax.experimental import pallas as pl
from jax.experimental.pallas import tpu as pltpu

EPS = 1e-12


def _round_up(x, m):
    return (x + m - 1) // m * m


def _pick_tile(s_pad):
    """Largest row-tile in {512, 256, 128} that divides the padded seq length."""
    for t in (512, 256, 128):
        if s_pad % t == 0:
            return t
    return 128  # unreachable: s_pad is always a multiple of 128


def _filter_stack_kernel(x_ref, f_ref, g_ref, b_ref, o_ref, acc_ref, accb_ref,
                         *, seq, hidden, tile):
    """One (batch, layer) grid step: acc <- LayerNorm(F @ acc) * gamma + beta + acc."""
    layer = pl.program_id(1)
    num_layers = pl.num_programs(1)
    s_pad, h_pad = acc_ref.shape
    n_tiles = s_pad // tile

    # Layer 0: load the (unpadded) activation into the zero-padded resident f32
    # accumulator.  Padded seq rows / hidden lanes start at exactly zero.
    @pl.when(layer == 0)
    def _init():
        if seq != s_pad or hidden != h_pad:
            acc_ref[...] = jnp.zeros_like(acc_ref)
        acc_ref[:seq, :hidden] = x_ref[0].astype(jnp.float32)

    # Stage the whole activation once per layer in bf16 for the MXU.  The tile
    # loop below only reads this staged copy for its matmuls, so it can safely
    # overwrite the f32 accumulator rows in place (no ping-pong buffer needed),
    # which also lets the LN/VPU work of tile t overlap the MXU of tile t+1.
    accb_ref[...] = acc_ref[...].astype(jnp.bfloat16)

    gvec = g_ref[layer]                       # (1, h_pad) f32, padded lanes are 0
    bvec = b_ref[layer]                       # (1, h_pad) f32, padded lanes are 0
    inv_h = 1.0 / hidden

    def tile_body(t, carry):
        r = t * tile
        if not isinstance(r, int):
            r = pl.multiple_of(r, tile)
        # MXU: this row-tile of the spectral filter against the full (old) activation.
        filt = jnp.dot(f_ref[pl.ds(r, tile), :], accb_ref[...],
                       preferred_element_type=jnp.float32)            # (tile, h_pad)
        # LayerNorm stats over the TRUE hidden dim.  Padded hidden lanes of `filt`
        # are exactly zero (F's padded columns and the accumulator's padded lanes
        # are zero), so plain sums are already exact; use the single-sweep
        # E[x^2] - mean^2 form (clamped against cancellation) — no iota/where mask.
        mean = jnp.sum(filt, axis=-1, keepdims=True) * inv_h
        ex2 = jnp.sum(filt * filt, axis=-1, keepdims=True) * inv_h
        var = jnp.maximum(ex2 - mean * mean, 0.0)
        normed = (filt - mean) * lax.rsqrt(var + EPS)
        old = acc_ref[pl.ds(r, tile), :]                               # f32 residual
        acc_ref[pl.ds(r, tile), :] = normed * gvec + bvec + old
        return carry

    if n_tiles == 1:
        tile_body(0, 0)
    else:
        lax.fori_loop(0, n_tiles, tile_body, 0, unroll=min(n_tiles, 4))

    # Last layer: write back only the real rows / lanes (output stays unpadded in HBM).
    @pl.when(layer == num_layers - 1)
    def _writeback():
        o_ref[0] = acc_ref[:seq, :hidden].astype(o_ref.dtype)


def _make_spectral_filter(seq_len: int, ratio: float) -> jnp.ndarray:
    """Real (S, S) matrix equivalent to rfft -> mask -> irfft (ortho norm)."""
    freqs = jnp.fft.rfftfreq(seq_len)                       # (S//2 + 1,)
    thresh = jnp.quantile(freqs, ratio)                     # linear interp (matches torch)
    mask = (freqs < thresh).astype(jnp.float32)
    eye = jnp.eye(seq_len, dtype=jnp.float32)
    spec = jnp.fft.rfft(eye, axis=0, norm="ortho")          # (S//2+1, S) complex
    filt = jnp.fft.irfft(mask[:, None] * spec, n=seq_len, axis=0, norm="ortho")
    return filt.astype(jnp.float32)                         # (S, S) real


def _const_block_spec(shape, index_map):
    """Invariant operand (block index never changes): request single buffering to
    halve its VMEM footprint; fall back to the default double-buffered spec if
    the running JAX lacks `pipeline_mode` (correct either way)."""
    try:
        return pl.BlockSpec(shape, index_map, pipeline_mode=pl.Buffered(1))
    except (AttributeError, TypeError):
        return pl.BlockSpec(shape, index_map)


def _physical_vmem_bytes():
    """Per-core physical VMEM (128 MiB on v5e/v6e, 64 MiB on v7x)."""
    try:
        return int(pltpu.get_tpu_info().vmem_capacity_bytes)
    except Exception:
        return 64 * 1024 * 1024   # conservative fallback (v7x per-TC)


def filter_layer_forward(x, gammas, betas, *, ratio=0.8):
    """x: (B, S, H) float32; gammas/betas: lists (len L) of (H,) LayerNorm params."""
    B, S, H = x.shape
    L = len(gammas)
    assert L == len(betas) and L >= 1

    S_pad = _round_up(S, 128)      # MXU contraction / sublane alignment
    H_pad = _round_up(H, 128)      # lane alignment of the resident accumulator
    tile = _pick_tile(S_pad)

    # Fixed spectral low-pass operator for the TRUE seq length, zero-padded and
    # stored bf16 for the MXU (padded rows / columns are exactly zero, so padded
    # activation rows never leak into real rows).
    f = _make_spectral_filter(S, ratio)
    f_pad = jnp.zeros((S_pad, S_pad), jnp.float32).at[:S, :S].set(f).astype(jnp.bfloat16)

    # Per-layer affine params, zero-padded on the lane axis so padded hidden
    # lanes of the activation stay exactly zero across layers.
    gamma = jnp.zeros((L, 1, H_pad), jnp.float32).at[:, 0, :H].set(jnp.stack(gammas))
    beta = jnp.zeros((L, 1, H_pad), jnp.float32).at[:, 0, :H].set(jnp.stack(betas))

    # VMEM budget (per core): F single-buffered + f32 accumulator + bf16 staging
    # + double-buffered unpadded x/out blocks + params + per-tile temporaries.
    est_vmem = (S_pad * S_pad * 2
                + S_pad * H_pad * (4 + 2)
                + 2 * 2 * S * H * 4
                + 2 * 2 * L * H_pad * 4
                + 6 * tile * H_pad * 4)
    vmem_limit = None
    if est_vmem > 16 * 1024 * 1024:
        ceiling = int(_physical_vmem_bytes() * 0.78)   # headroom for internal scratch
        vmem_limit = max(min(int(est_vmem * 1.4) + (4 << 20), ceiling), 32 * 1024 * 1024)

    kernel = functools.partial(_filter_stack_kernel, seq=S, hidden=H, tile=tile)

    return pl.pallas_call(
        kernel,
        out_shape=jax.ShapeDtypeStruct((B, S, H), x.dtype),
        grid_spec=pltpu.PrefetchScalarGridSpec(
            num_scalar_prefetch=0,
            grid=(B, L),                                           # layer axis innermost
            in_specs=[
                pl.BlockSpec((1, S, H), lambda b, l: (b, 0, 0)),            # x (unpadded)
                _const_block_spec((S_pad, S_pad), lambda b, l: (0, 0)),      # F (bf16)
                _const_block_spec((L, 1, H_pad), lambda b, l: (0, 0, 0)),    # gamma (all layers)
                _const_block_spec((L, 1, H_pad), lambda b, l: (0, 0, 0)),    # beta  (all layers)
            ],
            out_specs=pl.BlockSpec((1, S, H), lambda b, l: (b, 0, 0)),
            scratch_shapes=[
                pltpu.VMEM((S_pad, H_pad), jnp.float32),   # resident f32 activation
                pltpu.VMEM((S_pad, H_pad), jnp.bfloat16),  # bf16 staging for the MXU
            ],
        ),
        compiler_params=pltpu.CompilerParams(
            # Batch axis is parallel (megacore; on v7x keep >= 2 batch items per
            # chip so both TensorCores are busy).  The layer axis carries the
            # resident accumulator, hence "arbitrary".
            dimension_semantics=("parallel", "arbitrary"),
            vmem_limit_bytes=vmem_limit,
        ),
        cost_estimate=pl.CostEstimate(
            flops=2 * B * L * S_pad * S_pad * H_pad,
            transcendentals=B * L * S_pad,
            bytes_accessed=(2 * B * S * H * 4
                            + S_pad * S_pad * 2
                            + 2 * L * H_pad * 4),
        ),
    )(x, f_pad, gamma, beta)


def _reference_forward(x, gammas, betas, *, ratio=0.8):
    """Pure-JAX reference mirroring the PyTorch forward (eval mode)."""
    B, S, H = x.shape
    freqs = jnp.fft.rfftfreq(S)
    thresh = jnp.quantile(freqs, ratio)
    mask = (freqs < thresh).astype(jnp.float32)[None, :, None]    # (1, S//2+1, 1)
    for gamma, beta in zip(gammas, betas):
        fft_x = jnp.fft.rfft(x, axis=1, norm="ortho")
        filt = jnp.fft.irfft(fft_x * mask, n=S, axis=1, norm="ortho")
        mean = jnp.mean(filt, axis=-1, keepdims=True)
        var = jnp.mean((filt - mean) ** 2, axis=-1, keepdims=True)
        normed = (filt - mean) / jnp.sqrt(var + EPS)
        x = normed * gamma + beta + x
    return x


if __name__ == "__main__":
    key = jax.random.PRNGKey(0)
    B, S, H = 2, 8, 32
    num_layers = 2

    kx, kg, kb = jax.random.split(key, 3)
    x = jax.random.normal(kx, (B, S, H), dtype=jnp.float32)

    # Non-trivial deterministic affine params so per-layer gamma/beta indexing
    # and the LayerNorm affine path are actually exercised.
    gammas = [1.0 + 0.1 * jax.random.normal(jax.random.fold_in(kg, i), (H,), dtype=jnp.float32)
              for i in range(num_layers)]
    betas = [0.1 * jax.random.normal(jax.random.fold_in(kb, i), (H,), dtype=jnp.float32)
             for i in range(num_layers)]

    out = filter_layer_forward(x, gammas, betas, ratio=0.8)
    out = jax.block_until_ready(out)

    ref = _reference_forward(x, gammas, betas, ratio=0.8)
    # bf16 matmul operands with f32 accumulation -> relaxed tolerance vs f32 FFT ref.
    assert out.shape == ref.shape
    assert jnp.allclose(out, ref, atol=5e-2, rtol=5e-2), (
        f"mismatch vs reference, max abs diff {jnp.max(jnp.abs(out - ref))}")

    print("KERNEL_OK")
</pallas_src>

<mosaic_0001>
module attributes {stable_mosaic.version = 11 : i64} {
  func.func @_filter_stack_kernel(%arg0: i32, %arg1: i32, %arg2: memref<1x8x32xf32, #tpu.memory_space<vmem>>, %arg3: memref<128x128xbf16, #tpu.memory_space<vmem>>, %arg4: memref<2x1x128xf32, #tpu.memory_space<vmem>>, %arg5: memref<2x1x128xf32, #tpu.memory_space<vmem>>, %arg6: memref<1x8x32xf32, #tpu.memory_space<vmem>>, %arg7: memref<128x128xf32, #tpu.memory_space<vmem>>, %arg8: memref<128x128xbf16, #tpu.memory_space<vmem>>) attributes {dimension_semantics = [#tpu.dimension_semantics<parallel>, #tpu.dimension_semantics<arbitrary>], iteration_bounds = array<i64: 2, 2>, scalar_prefetch = 0 : i64, scratch_operands = 2 : i64, tpu.core_type = #tpu.core_type<tc>, window_params = [{transform_indices = @transform_0, window_bounds = array<i64: 1, 8, 32>}, {pipeline_mode = #tpu.pipeline_mode<synchronous>, transform_indices = @transform_1, window_bounds = array<i64: 128, 128>}, {pipeline_mode = #tpu.pipeline_mode<synchronous>, transform_indices = @transform_2, window_bounds = array<i64: 2, 1, 128>}, {pipeline_mode = #tpu.pipeline_mode<synchronous>, transform_indices = @transform_3, window_bounds = array<i64: 2, 1, 128>}, {transform_indices = @transform_4, window_bounds = array<i64: 1, 8, 32>}]} {
    %c0_i32 = arith.constant 0 : i32
    %0 = arith.cmpi eq, %arg1, %c0_i32 : i32
    %1 = arith.extui %0 : i1 to i32
    %c0_i32_0 = arith.constant 0 : i32
    %2 = arith.cmpi ne, %1, %c0_i32_0 : i32
    scf.if %2 {
      %cst_23 = arith.constant 0.000000e+00 : f32
      %45 = vector.broadcast %cst_23 : f32 to vector<128x128xf32>
      %c0_24 = arith.constant 0 : index
      %c0_25 = arith.constant 0 : index
      %46 = vector.load %arg7[%c0_24, %c0_25] : memref<128x128xf32, #tpu.memory_space<vmem>>, vector<128x128xf32>
      tpu.vector_store %arg7[%c0_24, %c0_25], %45 {strides = array<i32>} : memref<128x128xf32, #tpu.memory_space<vmem>>, vector<128x128xf32>,
      %c0_26 = arith.constant 0 : index
      %c0_27 = arith.constant 0 : index
      %c0_28 = arith.constant 0 : index
      %47 = vector.load %arg2[%c0_26, %c0_27, %c0_28] : memref<1x8x32xf32, #tpu.memory_space<vmem>>, vector<1x8x32xf32>
      %48 = vector.shape_cast %47 : vector<1x8x32xf32> to vector<8x32xf32>
      %c0_29 = arith.constant 0 : index
      %c0_30 = arith.constant 0 : index
      %49 = vector.load %arg7[%c0_29, %c0_30] : memref<128x128xf32, #tpu.memory_space<vmem>>, vector<8x32xf32>
      tpu.vector_store %arg7[%c0_29, %c0_30], %48 {strides = array<i32>} : memref<128x128xf32, #tpu.memory_space<vmem>>, vector<8x32xf32>,
    } else {
    }
    %c0 = arith.constant 0 : index
    %c0_1 = arith.constant 0 : index
    %3 = vector.load %arg7[%c0, %c0_1] : memref<128x128xf32, #tpu.memory_space<vmem>>, vector<128x128xf32>
    %4 = arith.truncf %3 : vector<128x128xf32> to vector<128x128xbf16>
    %c0_2 = arith.constant 0 : index
    %c0_3 = arith.constant 0 : index
    %5 = vector.load %arg8[%c0_2, %c0_3] : memref<128x128xbf16, #tpu.memory_space<vmem>>, vector<128x128xbf16>
    tpu.vector_store %arg8[%c0_2, %c0_3], %4 {strides = array<i32>} : memref<128x128xbf16, #tpu.memory_space<vmem>>, vector<128x128xbf16>,
    %6 = arith.index_cast %arg1 : i32 to index
    %c0_4 = arith.constant 0 : index
    %c0_5 = arith.constant 0 : index
    %7 = vector.load %arg4[%6, %c0_4, %c0_5] : memref<2x1x128xf32, #tpu.memory_space<vmem>>, vector<1x1x128xf32>
    %8 = vector.shape_cast %7 : vector<1x1x128xf32> to vector<1x128xf32>
    %9 = arith.index_cast %arg1 : i32 to index
    %c0_6 = arith.constant 0 : index
    %c0_7 = arith.constant 0 : index
    %10 = vector.load %arg5[%9, %c0_6, %c0_7] : memref<2x1x128xf32, #tpu.memory_space<vmem>>, vector<1x1x128xf32>
    %11 = vector.shape_cast %10 : vector<1x1x128xf32> to vector<1x128xf32>
    %c0_8 = arith.constant 0 : index
    %c0_9 = arith.constant 0 : index
    %12 = vector.load %arg3[%c0_8, %c0_9] : memref<128x128xbf16, #tpu.memory_space<vmem>>, vector<128x128xbf16>
    %c0_10 = arith.constant 0 : index
    %c0_11 = arith.constant 0 : index
    %13 = vector.load %arg8[%c0_10, %c0_11] : memref<128x128xbf16, #tpu.memory_space<vmem>>, vector<128x128xbf16>
    %cst = arith.constant dense<0.000000e+00> : vector<128x128xf32>
    %14 = tpu.matmul %12, %13, %cst {dimension_numbers = #tpu.dot_dimension_numbers<[1], [0], [0], [1], [0, 0, 1, 1], [], []>} : vector<128x128xbf16>, vector<128x128xbf16>, vector<128x128xf32> -> vector<128x128xf32>
    %cst_12 = arith.constant dense<0.000000e+00> : vector<128xf32>
    %15 = vector.multi_reduction <add>, %14, %cst_12 [1] : vector<128x128xf32> to vector<128xf32>
    %16 = vector.shape_cast %15 : vector<128xf32> to vector<128x1xf32>
    %cst_13 = arith.constant 3.125000e-02 : f32
    %17 = vector.broadcast %cst_13 : f32 to vector<128x1xf32>
    %18 = arith.mulf %16, %17 : vector<128x1xf32>
    %19 = arith.mulf %14, %14 : vector<128x128xf32>
    %cst_14 = arith.constant dense<0.000000e+00> : vector<128xf32>
    %20 = vector.multi_reduction <add>, %19, %cst_14 [1] : vector<128x128xf32> to vector<128xf32>
    %21 = vector.shape_cast %20 : vector<128xf32> to vector<128x1xf32>
    %cst_15 = arith.constant 3.125000e-02 : f32
    %22 = vector.broadcast %cst_15 : f32 to vector<128x1xf32>
    %23 = arith.mulf %21, %22 : vector<128x1xf32>
    %24 = arith.mulf %18, %18 : vector<128x1xf32>
    %25 = arith.subf %23, %24 : vector<128x1xf32>
    %cst_16 = arith.constant 0.000000e+00 : f32
    %26 = vector.broadcast %cst_16 : f32 to vector<128x1xf32>
    %27 = arith.maximumf %25, %26 : vector<128x1xf32>
    %28 = vector.broadcast %18 : vector<128x1xf32> to vector<128x128xf32>
    %29 = arith.subf %14, %28 : vector<128x128xf32>
    %cst_17 = arith.constant 9.99999996E-13 : f32
    %30 = vector.broadcast %cst_17 : f32 to vector<128x1xf32>
    %31 = arith.addf %27, %30 : vector<128x1xf32>
    %32 = math.rsqrt %31 : vector<128x1xf32>
    %33 = vector.broadcast %32 : vector<128x1xf32> to vector<128x128xf32>
    %34 = arith.mulf %29, %33 : vector<128x128xf32>
    %c0_18 = arith.constant 0 : index
    %c0_19 = arith.constant 0 : index
    %35 = vector.load %arg7[%c0_18, %c0_19] : memref<128x128xf32, #tpu.memory_space<vmem>>, vector<128x128xf32>
    %36 = vector.broadcast %8 : vector<1x128xf32> to vector<128x128xf32>
    %37 = arith.mulf %34, %36 : vector<128x128xf32>
    %38 = vector.broadcast %11 : vector<1x128xf32> to vector<128x128xf32>
    %39 = arith.addf %37, %38 : vector<128x128xf32>
    %40 = arith.addf %39, %35 : vector<128x128xf32>
    %c0_20 = arith.constant 0 : index
    %c0_21 = arith.constant 0 : index
    %41 = vector.load %arg7[%c0_20, %c0_21] : memref<128x128xf32, #tpu.memory_space<vmem>>, vector<128x128xf32>
    tpu.vector_store %arg7[%c0_20, %c0_21], %40 {strides = array<i32>} : memref<128x128xf32, #tpu.memory_space<vmem>>, vector<128x128xf32>,
    %c1_i32 = arith.constant 1 : i32
    %42 = arith.cmpi eq, %arg1, %c1_i32 : i32
    %43 = arith.extui %42 : i1 to i32
    %c0_i32_22 = arith.constant 0 : i32
    %44 = arith.cmpi ne, %43, %c0_i32_22 : i32
    scf.if %44 {
      %c0_23 = arith.constant 0 : index
      %c0_24 = arith.constant 0 : index
      %45 = vector.load %arg7[%c0_23, %c0_24] : memref<128x128xf32, #tpu.memory_space<vmem>>, vector<8x32xf32>
      %c0_25 = arith.constant 0 : index
      %c0_26 = arith.constant 0 : index
      %c0_27 = arith.constant 0 : index
      %46 = vector.load %arg6[%c0_25, %c0_26, %c0_27] : memref<1x8x32xf32, #tpu.memory_space<vmem>>, vector<1x8x32xf32>
      %47 = vector.shape_cast %46 : vector<1x8x32xf32> to vector<8x32xf32>
      %48 = vector.shape_cast %45 : vector<8x32xf32> to vector<1x8x32xf32>
      tpu.vector_store %arg6[%c0_25, %c0_26, %c0_27], %48 {strides = array<i32>} : memref<1x8x32xf32, #tpu.memory_space<vmem>>, vector<1x8x32xf32>,
    } else {
    }
    return
  }
  func.func @transform_0(%arg0: i32, %arg1: i32) -> (i32, i32, i32) {
    %c0_i32 = arith.constant 0 : i32
    %c0_i32_0 = arith.constant 0 : i32
    %c0_i32_1 = arith.constant 0 : i32
    return %arg0, %c0_i32, %c0_i32_0 : i32, i32, i32
  }
  func.func @transform_1(%arg0: i32, %arg1: i32) -> (i32, i32) {
    %c0_i32 = arith.constant 0 : i32
    %c0_i32_0 = arith.constant 0 : i32
    %c0_i32_1 = arith.constant 0 : i32
    return %c0_i32, %c0_i32_0 : i32, i32
  }
  func.func @transform_2(%arg0: i32, %arg1: i32) -> (i32, i32, i32) {
    %c0_i32 = arith.constant 0 : i32
    %c0_i32_0 = arith.constant 0 : i32
    %c0_i32_1 = arith.constant 0 : i32
    %c0_i32_2 = arith.constant 0 : i32
    return %c0_i32, %c0_i32_0, %c0_i32_1 : i32, i32, i32
  }
  func.func @transform_3(%arg0: i32, %arg1: i32) -> (i32, i32, i32) {
    %c0_i32 = arith.constant 0 : i32
    %c0_i32_0 = arith.constant 0 : i32
    %c0_i32_1 = arith.constant 0 : i32
    %c0_i32_2 = arith.constant 0 : i32
    return %c0_i32, %c0_i32_0, %c0_i32_1 : i32, i32, i32
  }
  func.func @transform_4(%arg0: i32, %arg1: i32) -> (i32, i32, i32) {
    %c0_i32 = arith.constant 0 : i32
    %c0_i32_0 = arith.constant 0 : i32
    %c0_i32_1 = arith.constant 0 : i32
    return %arg0, %c0_i32, %c0_i32_0 : i32, i32, i32
  }
}

</mosaic_0001>

<bundles_post_ra>
// kernel: tpu_custom_call.1
= control target key start
LH: loop header
LB: loop body
LE: loop exit
PB: predicated region body
PF: predicated region fallthrough
CT: control target
= control target key end

     0   :  { %s1994_s0 = inlined_call_operand.hbm [shape: f32[2,8,32], index: 0, kind: input, shape index: {}]   ;;  %s1995_s1 = inlined_call_operand.hbm [shape: bf16[128,128], index: 1, kind: input, shape index: {}]   ;;  %s1996_s2 = inlined_call_operand.vmem [shape: f32[2,1,128], index: 2, kind: input, shape index: {}]   ;;  %s1997_s3 = inlined_call_operand.vmem [shape: f32[2,1,128], index: 3, kind: input, shape index: {}]   ;;  %s1998_s4 = inlined_call_operand.hbm [shape: f32[2,8,32], index: 4, kind: output, shape index: {}]  }
   0x1   :  { %2000 = sst [smem:[#allocation14_spill]] %s1995_s1 }
   0x2   :  { %9 = vsyncpa [#allocation5], 0 }
   0x3   :  { %11 = vsyncpa [#allocation5 + $0x1], 0 }
   0x4   :  { %12 = vsyncpa [#allocation8], 0 }
   0x5   :  { %13 = vsyncpa [#allocation6], 0 }
   0x6   :  { %15 = vsyncpa [#allocation6 + $0x1], 0  ;;  %s1524_s15 = smov 0   ;;  %s1526_s16 = smov 0  }
   0x7   :  { %s1528_s17 = smov 0   ;;  %s1530_s18 = smov 0  }
   0x8   :  { %s1532_s19 = smov 0   ;;  %s1534_s20 = smov 0  }
   0x9   :  { %s1536_s21 = smov 0   ;;  %s1538_s22 = smov 0  }
   0xa LB: > { %s1019_s23 = sadd.s32 4294967295, %s1491_s22   ;;  %s1020_s24 = sadd.s32 4294967294, %s1491_s22   ;;  %s1491_s22 = sphi %s1538_s22, %s21_s22   ;;  %s1487_s21 = sphi %s1536_s21, %s2019_s21   ;;  %s1483_s20 = sphi %s1534_s20, %s2018_s20   ;;  %s1479_s19 = sphi %s1532_s19, %s2017_s19   ;;  %s1475_s18 = sphi %s1530_s18, %s2016_s18   ;;  %s1471_s17 = sphi %s1528_s17, %s2015_s17   ;;  %s1467_s16 = sphi %s1526_s16, %s2014_s16   ;;  %s1463_s15 = sphi %s1524_s15, %s2013_s15  }
   0xb   : > { %p53_p0 = scmp.ne.s32.totalorder %s1467_s16, %s1463_s15  ;;  %p1568_p1 = scmp.eq.s32.totalorder %s1019_s23, 0 }
   0xc   : > { %p1572_p2 = scmp.eq.s32.totalorder %s1019_s23, 3  ;;  %p146_p3 = scmp.eq.s32.totalorder %s1020_s24, 3 }
   0xd   : > { %p1578_p4 = por %p1568_p1, %p53_p0  ;;  %p1021_p5 = scmp.ge.s32.totalorder %s1491_s22, 1 }
   0xe   : > { %p1583_p6 = por %p146_p3, %p53_p0  ;;  %p153_p7 = scmp.lt.s32.totalorder %s1491_s22, 5 }
   0xf   : > { %s2003_s27 = scalar_select %p1578_p4, 1, 0 }
  0x10   : > { %s2004_s28 = scalar_select %p1583_p6, 1, 0 }
  0x11   : > { %p1588_p8 = pnand %p1021_p5, %p153_p7  ;;  %s1493_s30 = smov [#allocation7]  }
  0x12   : > { %s165_s5 = sshll.u32 %s1493_s30, 4  ;;  %s166_s5 = int_to_ptr.vmem [resolvable:$true] %s165_s5 }
  0x13   : > { %p1205_p9 = pneg %p1588_p8  ;;  %s1348_s6 = scalar_lea.vmem %s166_s5, 1024 }
  0x14   : > { %p1349_p12 = scmp.ne.s32.totalorder %s166_s5, %s1348_s6  ;;  %p1356_p3 = scmp.lt.s32.totalorder %s166_s5, %s166_s5 }
  0x15   : > { %p1206_p10 = pnand %p1205_p9, %p1568_p1  ;;  %p1357_p6 = scmp.lt.s32.totalorder %s1348_s6, %s1348_s6 }
  0x17   : > { %p1339_p11 = pneg %p1206_p10  ;;  %p1358_p4 = por %p1357_p6, %p1356_p3 }
  0x19   : > { %p1351_p13 = pnand %p1349_p12, %p1339_p11 }
  0x1b   : > { %p1352_p0 = pneg %p1351_p13 }
  0x1d   : > { %p1359_p5 = pnand %p1358_p4, %p1352_p0 }
  0x1f   : > { %1362 = shalt.err (!%p1359_p5)
}
  0x20   : > { %s1494_s7 = smov 64   ;;  %s1495_s8 = smov 4  }
  0x21   : > { %s2006_s1 = sld [smem:[#allocation14_spill]]  ;;  %s30_s11 = sadd.s32 1, %s1483_s20 }
  0x22   : > { %p31_p4 = scmp.ge.s32.totalorder %s30_s11, 2  ;;  %s33_s12 = sadd.s32 1, %s1487_s21 }
  0x23   : > { %s40_s13 = sadd.s32 1, %s1471_s17  ;;  %p47_p6 = scmp.ne.s32.totalorder %s1471_s17, %s1467_s16 }
  0x24   : > { %s2021_s11 = smov (%p31_p4, %s30_s11), 0  ;;  %s2023_s12 = smov (!%p31_p4, %s33_s12), %s1487_s21 }
  0x25   : > { %2007 = sst [smem:[#allocation13_spill]] %s2021_s11  ;;  %p48_p7 = scmp.eq.s32.totalorder %s1491_s22, 0 }
  0x26   : > { %p1610_p9 = por %p1572_p2, %p47_p6  ;;  %p35_p11 = scmp.ge.s32.totalorder %s2023_s12, 2 }
  0x27   : > { %1208 = dma.hbm_to_vmem [thread:$0]  (!%p1206_p10), %s2006_s1, 1024, %s166_s5, [#allocation8], %s1494_s7, %s1494_s7, %s1495_s8  }
  0x28   : > { %p1218_p10 = scmp.lt.s32.totalorder %s1491_s22, 4  ;;  %p49_p12 = por %p48_p7, %p47_p6 }
  0x29   : > { %s185_s23 = sand.u32 1, %s1471_s17   ;;  %s2025_s12 = smov (%p35_p11, %s2023_s12), 0 }
  0x2a   : > { %s1024_s24 = sshll.u32 %s185_s23, 3  ;;  %s37_s30 = ssub.s32 %s1487_s21, %s2025_s12 }
  0x2b   : > { %p38_p13 = scmp.eq.s32.totalorder %s37_s30, 0  ;;  %s1025_s5 = sshll.u32 %s1487_s21, 7 }
  0x2c   : > { %s194_s26 = scalar_lea.hbm %s1994_s0, %s1025_s5  ;;  %s189_s8 = scalar_lea.vmem [#allocation4], %s1024_s24 }
  0x2d   : > { %s196_s9 = sshll.u32 %s189_s8, 4  ;;  %p1629_p2 = pnand %p1218_p10, %p49_p12  ;;  %s197_s9 = int_to_ptr.vmem [resolvable:$true] %s196_s9 }
  0x2e   : > { %s1625_s10 = scalar_select %p38_p13, %s1471_s17, %s40_s13  }
  0x2f   : > { %s186_s11 = scalar_lea.sflag [#allocation5], %s185_s23  ;;  %p1365_p0 = pneg %p1629_p2 }
  0x30   : > { %s1376_s30 = scalar_lea.vmem %s197_s9, 128  ;;  %s1496_s6 = smov [#allocation4]  }
  0x31   : > { %p1377_p3 = scmp.ne.s32.totalorder %s197_s9, %s1376_s30  ;;  %s1381_s5 = sshll.u32 %s1496_s6, 4  ;;  %s1382_s5 = int_to_ptr.vmem [resolvable:$false] %s1381_s5 }
  0x32   : > { %s1383_s24 = scalar_lea.vmem %s1382_s5, 256  ;;  %p1384_p6 = scmp.lt.s32.totalorder %s197_s9, %s1382_s5 }
  0x33   : > { %p1379_p5 = pnand %p1377_p3, %p1365_p0  ;;  %p1385_p7 = scmp.lt.s32.totalorder %s1383_s24, %s1376_s30 }
  0x35   : > { %p1380_p4 = pneg %p1379_p5  ;;  %p1386_p11 = por %p1385_p7, %p1384_p6 }
  0x37   : > { %p1387_p13 = pnand %p1386_p11, %p1380_p4 }
  0x39   : > { %1390 = shalt.err (!%p1387_p13)
}
  0x3a   : > { %1212 = dma.hbm_to_vmem [thread:$0]  (!%p1629_p2), %s194_s26, 128, %s197_s9, %s186_s11  }
  0x3b   : > { %205 = sbr.rel (%p1588_p8) target bundleno = 580 (0x244), region = 36  ;;  %s1640_s13 = sand.u32 (!%p1588_p8), 1, %s1467_s16  }
  0x3c   : > { %s1027_s23 = sshll.u32 (!%p1588_p8), %s1640_s13, 3  ;;  %s208_s7 = scalar_lea.sflag (!%p1588_p8), [#allocation5], %s1640_s13 }
  0x3d   : > { %s211_s8 = scalar_lea.vmem (!%p1588_p8), [#allocation4], %s1027_s23  ;;  %p2010_p10 = scmp.ne.s32.totalorder (!%p1588_p8), %s2003_s27, 0 }
  0x40   : > { %1450 = dma.done.wait (%p2010_p10), %s208_s7, 128  }
  0x41   : > { %1452 = vsyncadd (%p2010_p10), %s208_s7, 4294967168 }
  0x42   : > { %1454 = dma.done.wait (%p1568_p1), [#allocation8], 1024  }
  0x43   : > { %1456 = vsyncadd (%p1568_p1), [#allocation8], 4294966272  ;;  %s1652_s1 = scalar_lea.vmem [#allocation9], %s1027_s23  ;;  %p1030_p8 = scmp.ne.s32.totalorder %s1475_s18, 0 }
  0x45   : > { %244 = sbr.rel (%p1030_p8) target bundleno = 84 (0x54), region = 48 }
  0x4a   : > { %v261_v0 = vld [vmem:[%s211_s8] sm:$0xff]  ;;  %vm262_vm0 = vcmask 261120   ;;  %v1497_v1 = vmov 0.0  }
  0x4b   : > { %245 = vst [vmem:[#allocation2] sm:$0xff] %v1497_v1  ;;  %246 = vst [vmem:[#allocation2 + $0x8] sm:$0xff] %v1497_v1 }
  0x4c   : > { %247 = vst [vmem:[#allocation2 + $0x10] sm:$0xff] %v1497_v1  ;;  %248 = vst [vmem:[#allocation2 + $0x18] sm:$0xff] %v1497_v1 }
  0x4d   : > { %249 = vst [vmem:[#allocation2 + $0x20] sm:$0xff] %v1497_v1  ;;  %250 = vst [vmem:[#allocation2 + $0x28] sm:$0xff] %v1497_v1 }
  0x4e   : > { %251 = vst [vmem:[#allocation2 + $0x30] sm:$0xff] %v1497_v1  ;;  %252 = vst [vmem:[#allocation2 + $0x38] sm:$0xff] %v1497_v1 }
  0x4f   : > { %253 = vst [vmem:[#allocation2 + $0x40] sm:$0xff] %v1497_v1  ;;  %254 = vst [vmem:[#allocation2 + $0x48] sm:$0xff] %v1497_v1 }
  0x50   : > { %255 = vst [vmem:[#allocation2 + $0x50] sm:$0xff] %v1497_v1  ;;  %256 = vst [vmem:[#allocation2 + $0x58] sm:$0xff] %v1497_v1 }
  0x51   : > { %257 = vst [vmem:[#allocation2 + $0x60] sm:$0xff] %v1497_v1  ;;  %258 = vst [vmem:[#allocation2 + $0x68] sm:$0xff] %v1497_v1 }
  0x52   : > { %259 = vst [vmem:[#allocation2 + $0x70] sm:$0xff] %v1497_v1  ;;  %260 = vst [vmem:[#allocation2 + $0x78] sm:$0xff] %v1497_v1 }
  0x53   : > { %263 = vst.msk [vmem:[#allocation2] sm:$0xff] %vm262_vm0, %v261_v0 }
  0x54 PF: > { %v1684_v16 = vld [vmem:[#allocation2 + $0x20] sm:$0xff]  ;;  %v1686_v17 = vld [vmem:[#allocation2 + $0x28] sm:$0xff]  ;;  %v1692_v20 = vld [vmem:[#allocation2 + $0x10] sm:$0xff]  ;;  %s360_s29 = scalar_lea.vmem %s1996_s2, %s1475_s18  ;;  %s362_s9 = scalar_lea.vmem %s1997_s3, %s1475_s18 }
  0x55   : > { %v1678_v13 = vld [vmem:[#allocation2 + $0x30] sm:$0xff]  ;;  %v1682_v15 = vld [vmem:[#allocation2 + $0x38] sm:$0xff]  ;;  %v1099_v19 = vpack.c.bf16 %v1686_v17, %v1684_v16  ;;  %v1700_v24 = vld [vmem:[#allocation2 + $0x8] sm:$0xff]  ;;  %p1065_p1 = scmp.ne.s32.totalorder %s1475_s18, 1 }
  0x56   : > { %v1674_v11 = vld [vmem:[#allocation2 + $0x40] sm:$0xff]  ;;  %v1676_v12 = vld [vmem:[#allocation2 + $0x48] sm:$0xff]  ;;  %v1104_v18 = vpack.c.bf16 %v1682_v15, %v1678_v13  ;;  %v1694_v21 = vld [vmem:[#allocation2 + $0x18] sm:$0xff] }
  0x57   : > { %v1666_v7 = vld [vmem:[#allocation2 + $0x50] sm:$0xff]  ;;  %v1668_v8 = vld [vmem:[#allocation2 + $0x58] sm:$0xff]  ;;  %v1109_v14 = vpack.c.bf16 %v1676_v12, %v1674_v11  ;;  %v1094_v23 = vpack.c.bf16 %v1694_v21, %v1692_v20  ;;  %1127 = vst [vmem:[#allocation3 + $0x10] sm:$0xff] %v1099_v19   ;;  %v1301_v38 = vld [vmem:[#allocation7 + $0x10] sm:$0xff]  }
  0x58   : > { %v1660_v4 = vld [vmem:[#allocation2 + $0x60] sm:$0xff]  ;;  %v1664_v6 = vld [vmem:[#allocation2 + $0x68] sm:$0xff]  ;;  %v1114_v10 = vpack.c.bf16 %v1668_v8, %v1666_v7  ;;  %1128 = vst [vmem:[#allocation3 + $0x18] sm:$0xff] %v1104_v18   ;;  %v1297_v26 = vld [vmem:[#allocation7] sm:$0xff]  }
  0x59   : > { %v1656_v2 = vld [vmem:[#allocation2 + $0x70] sm:$0xff]  ;;  %v1658_v3 = vld [vmem:[#allocation2 + $0x78] sm:$0xff]  ;;  %v1119_v9 = vpack.c.bf16 %v1664_v6, %v1660_v4  ;;  %1129 = vst [vmem:[#allocation3 + $0x20] sm:$0xff] %v1109_v14   ;;  %1126 = vst [vmem:[#allocation3 + $0x8] sm:$0xff] %v1094_v23   ;;  %1165 = vmatprep.mubr.bf16.mxu0 %v1297_v26 }
  0x5a   : > { %v1124_v5 = vpack.c.bf16 %v1658_v3, %v1656_v2  ;;  %1130 = vst [vmem:[#allocation3 + $0x28] sm:$0xff] %v1114_v10   ;;  %v1696_v22 = vld [vmem:[#allocation2] sm:$0xff]  ;;  %v1298_v27 = vld [vmem:[#allocation7 + $0x20] sm:$0xff]   ;;  %v1299_v36 = vld [vmem:[#allocation7 + $0x8] sm:$0xff]  }
  0x5b   : > { %1131 = vst [vmem:[#allocation3 + $0x30] sm:$0xff] %v1119_v9   ;;  %v1089_v25 = vpack.c.bf16 %v1700_v24, %v1696_v22  ;;  %1173 = vmatprep.mubr.bf16.mxu1 %v1298_v27  ;;  %v1300_v37 = vld [vmem:[#allocation7 + $0x28] sm:$0xff]   ;;  %v1303_v39 = vld [vmem:[#allocation7 + $0x30] sm:$0xff]   ;;  %v1302_v40 = vld [vmem:[#allocation7 + $0x18] sm:$0xff]  }
  0x5c   : > { %1132 = vst [vmem:[#allocation3 + $0x38] sm:$0xff] %v1124_v5   ;;  %v1304_v41 = vld [vmem:[#allocation7 + $0x38] sm:$0xff]  }
  0x5d   : > { %1090 = vst [vmem:[#allocation3] sm:$0xff] %v1089_v25  }
  0x5e   : > { %v1294_v33 = vld [vmem:[#allocation3 + $0x10] sm:$0xff]  }
  0x5f   : > { %v1293_v32 = vld [vmem:[#allocation3 + $0x18] sm:$0xff]  }
  0x60   : > { %v1292_v31 = vld [vmem:[#allocation3 + $0x20] sm:$0xff]   ;;  %v1295_v34 = vld [vmem:[#allocation3 + $0x8] sm:$0xff]  }
  0x61   : > { %v1291_v30 = vld [vmem:[#allocation3 + $0x28] sm:$0xff]  }
  0x62   : > { %v1290_v29 = vld [vmem:[#allocation3 + $0x30] sm:$0xff]  }
  0x63   : > { %v1289_v28 = vld [vmem:[#allocation3 + $0x38] sm:$0xff]  }
  0x64   : > { %1149 = vmatprep.subr.bf16.mxu0 %v1289_v28  ;;  %1181 = vmatprep.subr.bf16.mxu1 %v1289_v28  ;;  %v1296_v35 = vld [vmem:[#allocation3] sm:$0xff]  }
  0x65   : > { %1150 = vmatpush3.bf16.msra.mxu0 %v1289_v28  ;;  %1189 = vmatpush3.bf16.msra.mxu1 %v1289_v28 }
  0x66   : > { %1151 = vmatprep.subr.bf16.mxu0 %v1290_v29  ;;  %1182 = vmatprep.subr.bf16.mxu1 %v1290_v29 }
  0x69   : > { %1152 = vmatpush3.bf16.msra.mxu0 %v1290_v29  ;;  %1190 = vmatpush3.bf16.msra.mxu1 %v1290_v29 }
  0x6a   : > { %1153 = vmatprep.subr.bf16.mxu0 %v1291_v30  ;;  %1183 = vmatprep.subr.bf16.mxu1 %v1291_v30 }
  0x6d   : > { %1154 = vmatpush3.bf16.msra.mxu0 %v1291_v30  ;;  %1191 = vmatpush3.bf16.msra.mxu1 %v1291_v30 }
  0x6e   : > { %1155 = vmatprep.subr.bf16.mxu0 %v1292_v31  ;;  %1184 = vmatprep.subr.bf16.mxu1 %v1292_v31 }
  0x71   : > { %1156 = vmatpush3.bf16.msra.mxu0 %v1292_v31  ;;  %1192 = vmatpush3.bf16.msra.mxu1 %v1292_v31 }
  0x72   : > { %1157 = vmatprep.subr.bf16.mxu0 %v1293_v32  ;;  %1185 = vmatprep.subr.bf16.mxu1 %v1293_v32 }
  0x75   : > { %1158 = vmatpush3.bf16.msra.mxu0 %v1293_v32  ;;  %1193 = vmatpush3.bf16.msra.mxu1 %v1293_v32 }
  0x76   : > { %1159 = vmatprep.subr.bf16.mxu0 %v1294_v33  ;;  %1186 = vmatprep.subr.bf16.mxu1 %v1294_v33 }
  0x79   : > { %1160 = vmatpush3.bf16.msra.mxu0 %v1294_v33  ;;  %1194 = vmatpush3.bf16.msra.mxu1 %v1294_v33 }
  0x7a   : > { %1161 = vmatprep.subr.bf16.mxu0 %v1295_v34  ;;  %1187 = vmatprep.subr.bf16.mxu1 %v1295_v34 }
  0x7d   : > { %1162 = vmatpush3.bf16.msra.mxu0 %v1295_v34  ;;  %1195 = vmatpush3.bf16.msra.mxu1 %v1295_v34 }
  0x7e   : > { %1163 = vmatprep.subr.bf16.mxu0 %v1296_v35  ;;  %1188 = vmatprep.subr.bf16.mxu1 %v1296_v35 }
  0x81   : > { %1164 = vmatpush3.bf16.msra.mxu0 %v1296_v35  ;;  %1196 = vmatpush3.bf16.msra.mxu1 %v1296_v35 }
  0x84   : > { %1166 = vmatmul.mubr.bf16.vlgmr.msra.gmra.mxu0 %v1299_v36  ;;  %1174 = vmatmul.mubr.bf16.vlgmr.msra.gmra.mxu1 %v1300_v37 }
  0x85   : > { %1169 = vmatprep.mubr.bf16.mxu0 %v1301_v38  ;;  %1177 = vmatprep.mubr.bf16.mxu1 %v1303_v39 }
  0x8c   : > { %1170 = vmatmul.mubr.bf16.gmra.mxu0 %v1302_v40  ;;  %1178 = vmatmul.mubr.bf16.gmra.mxu1 %v1304_v41 }
 0x144   : > { %v1704_v42 = vpop.f32.mrf.mxu0  ;;  %v1706_v43 = vpop.f32.mrf.mxu1 }
 0x145   : > { %609 = vadd.xlane.f32.xlu0 %v1706_v43  ;;  %593 = vadd.xlane.f32.xlu1 %v1704_v42  ;;  %v639_v48 = vmul.f32 %v1704_v42, %v1704_v42  ;;  %v647_v50 = vmul.f32 %v1706_v43, %v1706_v43 }
 0x146   : > { %v1710_v44 = vpop.f32.mrf.mxu0  ;;  %v1712_v45 = vpop.f32.mrf.mxu1 }
 0x147   : > { %v637_v52 = vmul.f32 %v1710_v44, %v1710_v44  ;;  %v645_v55 = vmul.f32 %v1712_v45, %v1712_v45 }
 0x148   : > { %v1714_v46 = vpop.f32.mrf.mxu0  ;;  %v1718_v47 = vpop.f32.mrf.mxu1 }
 0x149   : > { %589 = vadd.xlane.f32.xlu0 %v1710_v44  ;;  %595 = vadd.xlane.f32.xlu1 %v1714_v46  ;;  %v640_v51 = vmul.f32 %v1714_v46, %v1714_v46  ;;  %v648_v53 = vmul.f32 %v1718_v47, %v1718_v47 }
 0x14a   : > { %v1724_v49 = vpop.f32.mrf.mxu1  ;;  %v1735_v54 = vpop.f32.mrf.mxu0 }
 0x14b   : > { %v638_v56 = vmul.f32 %v1735_v54, %v1735_v54  ;;  %v646_v58 = vmul.f32 %v1724_v49, %v1724_v49 }
 0x14c   : > { %v1741_v57 = vpop.f32.mrf.mxu0  ;;  %v1747_v60 = vpop.f32.mrf.mxu1 }
 0x14d   : > { %605 = vadd.xlane.f32.xlu0 %v1712_v45  ;;  %611 = vadd.xlane.f32.xlu1 %v1718_v47  ;;  %v643_v5 = vmul.f32 %v1741_v57, %v1741_v57  ;;  %v651_v23 = vmul.f32 %v1747_v60, %v1747_v60 }
 0x14e   : > { %v1745_v59 = vpop.f32.mrf.mxu0  ;;  %v1752_v62 = vpop.f32.mrf.mxu1 }
 0x14f   : > { %v641_v10 = vmul.f32 %v1745_v59, %v1745_v59  ;;  %v649_v18 = vmul.f32 %v1752_v62, %v1752_v62 }
 0x150   : > { %v1750_v61 = vpop.f32.mrf.mxu0  ;;  %v1756_v63 = vpop.f32.mrf.mxu1 }
 0x151   : > { %657 = vadd.xlane.f32.xlu0 %v639_v48  ;;  %607 = vadd.xlane.f32.xlu1 %v1724_v49  ;;  %v644_v9 = vmul.f32 %v1750_v61, %v1750_v61  ;;  %v652_v25 = vmul.f32 %v1756_v63, %v1756_v63 }
 0x152   : > { %v1760_v0 = vpop.f32.mrf.mxu0  ;;  %v1764_v1 = vpop.f32.mrf.mxu1 }
 0x153   : > { %v642_v14 = vmul.f32 %v1760_v0, %v1760_v0  ;;  %v650_v19 = vmul.f32 %v1764_v1, %v1764_v1 }
 0x155   : > { %673 = vadd.xlane.f32.xlu0 %v647_v50  ;;  %659 = vadd.xlane.f32.xlu1 %v640_v51 }
 0x159   : > { %653 = vadd.xlane.f32.xlu0 %v637_v52  ;;  %675 = vadd.xlane.f32.xlu1 %v648_v53 }
 0x15d   : > { %669 = vadd.xlane.f32.xlu0 %v645_v55  ;;  %655 = vadd.xlane.f32.xlu1 %v638_v56 }
 0x161   : > { %591 = vadd.xlane.f32.xlu0 %v1735_v54  ;;  %671 = vadd.xlane.f32.xlu1 %v646_v58 }
 0x165   : > { %601 = vadd.xlane.f32.xlu0 %v1741_v57  ;;  %603 = vadd.xlane.f32.xlu1 %v1750_v61 }
 0x169   : > { %617 = vadd.xlane.f32.xlu0 %v1747_v60  ;;  %619 = vadd.xlane.f32.xlu1 %v1756_v63 }
 0x16d   : > { %597 = vadd.xlane.f32.xlu0 %v1745_v59  ;;  %599 = vadd.xlane.f32.xlu1 %v1760_v0 }
 0x171   : > { %613 = vadd.xlane.f32.xlu0 %v1752_v62  ;;  %615 = vadd.xlane.f32.xlu1 %v1764_v1 }
 0x175   : > { %665 = vadd.xlane.f32.xlu0 %v643_v5  ;;  %667 = vadd.xlane.f32.xlu1 %v644_v9 }
 0x179   : > { %661 = vadd.xlane.f32.xlu0 %v641_v10  ;;  %663 = vadd.xlane.f32.xlu1 %v642_v14 }
 0x17d   : > { %677 = vadd.xlane.f32.xlu0 %v649_v18  ;;  %679 = vadd.xlane.f32.xlu1 %v650_v19 }
 0x181   : > { %681 = vadd.xlane.f32.xlu0 %v651_v23  ;;  %683 = vadd.xlane.f32.xlu1 %v652_v25 }
 0x1ce   : > { %v610_v26 = vpop.xlane.xlu0 %609  ;;  %v594_v27 = vpop.xlane.xlu1 %593 }
 0x1cf   : > { %v1784_v32 = vmul.f32 0.03125, %v594_v27  ;;  %v1786_v33 = vmul.f32 0.03125, %v610_v26 }
 0x1d1   : > { %v703_v36 = vmul.f32 %v1784_v32, %v1784_v32  ;;  %v711_v40 = vmul.f32 %v1786_v33, %v1786_v33 }
 0x1d2   : > { %v590_v28 = vpop.xlane.xlu0 %589  ;;  %v596_v29 = vpop.xlane.xlu1 %595 }
 0x1d3   : > { %v1790_v37 = vmul.f32 0.03125, %v596_v29  ;;  %v1794_v41 = vmul.f32 0.03125, %v590_v28 }
 0x1d5   : > { %v704_v51 = vmul.f32 %v1790_v37, %v1790_v37  ;;  %v701_v10 = vmul.f32 %v1794_v41, %v1794_v41 }
 0x1d6   : > { %v606_v30 = vpop.xlane.xlu0 %605  ;;  %v612_v31 = vpop.xlane.xlu1 %611 }
 0x1d7   : > { %v1798_v56 = vmul.f32 0.03125, %v612_v31  ;;  %v1802_v14 = vmul.f32 0.03125, %v606_v30 }
 0x1d9   : > { %v712_v27 = vmul.f32 %v1798_v56, %v1798_v56  ;;  %v709_v30 = vmul.f32 %v1802_v14, %v1802_v14 }
 0x1da   : > { %v658_v34 = vpop.xlane.xlu0 %657  ;;  %v608_v35 = vpop.xlane.xlu1 %607 }
 0x1db   : > { %v687_v38 = vmul.f32 0.03125, %v658_v34 }
 0x1dd   : > { %v719_v39 = vsub.f32 %v687_v38, %v703_v36  ;;  %v1806_v36 = vmul.f32 0.03125, %v608_v35 }
 0x1de   : > { %v674_v48 = vpop.xlane.xlu0 %673  ;;  %v660_v50 = vpop.xlane.xlu1 %659 }
 0x1df   : > { %v735_v52 = vmax.f32 %v719_v39, 0.0  ;;  %v695_v53 = vmul.f32 0.03125, %v674_v48  ;;  %v688_v55 = vmul.f32 0.03125, %v660_v50 }
 0x1e1   : > { %v767_v58 = vadd.f32 1e-12, %v735_v52  ;;  %v727_v5 = vsub.f32 %v695_v53, %v711_v40  ;;  %v720_v9 = vsub.f32 %v688_v55, %v704_v51  ;;  %v710_v55 = vmul.f32 %v1806_v36, %v1806_v36 }
 0x1e2   : > { %v654_v18 = vpop.xlane.xlu0 %653  ;;  %v676_v19 = vpop.xlane.xlu1 %675 }
 0x1e3   : > { %1305 = vrsqrt.f32 %v767_v58  ;;  %v743_v23 = vmax.f32 %v727_v5, 0.0  ;;  %v736_v25 = vmax.f32 %v720_v9, 0.0  ;;  %v685_v26 = vmul.f32 0.03125, %v654_v18 }
 0x1e4   : > { %v696_v28 = vmul.f32 0.03125, %v676_v19 }
 0x1e5   : > { %v775_v29 = vadd.f32 1e-12, %v743_v23  ;;  %v768_v31 = vadd.f32 1e-12, %v736_v25  ;;  %v717_v34 = vsub.f32 %v685_v26, %v701_v10 }
 0x1e6   : > { %v728_v38 = vsub.f32 %v696_v28, %v712_v27  ;;  %v670_v39 = vpop.xlane.xlu0 %669  ;;  %v656_v40 = vpop.xlane.xlu1 %655 }
 0x1e7   : > { %1307 = vrsqrt.f32 %v775_v29  ;;  %v733_v48 = vmax.f32 %v717_v34, 0.0  ;;  %v693_v50 = vmul.f32 0.03125, %v670_v39  ;;  %v686_v23 = vmul.f32 0.03125, %v656_v40  ;;  %v1826_v39 = vld [vmem:[%s360_s29] ss:$0 sm:$0xff] }
 0x1e8   : > { %1309 = vrsqrt.f32 %v768_v31  ;;  %v744_v51 = vmax.f32 %v728_v38, 0.0  ;;  %v751_v29 = vsub.f32 %v1704_v42, %v1784_v32  ;;  %v759_v42 = vsub.f32 %v1706_v43, %v1786_v33 }
 0x1e9   : > { %v765_v52 = vadd.f32 1e-12, %v733_v48  ;;  %v725_v53 = vsub.f32 %v693_v50, %v709_v30  ;;  %v1828_v50 = vld [vmem:[%s362_s9] ss:$0 sm:$0xff] }
 0x1ea   : > { %v776_v58 = vadd.f32 1e-12, %v744_v51  ;;  %v592_v35 = vpop.xlane.xlu0 %591  ;;  %v672_v5 = vpop.xlane.xlu1 %671 }
 0x1eb   : > { %1311 = vrsqrt.f32 %v765_v52  ;;  %v741_v9 = vmax.f32 %v725_v53, 0.0  ;;  %v1812_v10 = vmul.f32 0.03125, %v592_v35  ;;  %v694_v18 = vmul.f32 0.03125, %v672_v5 }
 0x1ec   : > { %1313 = vrsqrt.f32 %v776_v58  ;;  %v752_v58 = vsub.f32 %v1714_v46, %v1790_v37 }
 0x1ed   : > { %v773_v19 = vadd.f32 1e-12, %v741_v9  ;;  %v702_v25 = vmul.f32 %v1812_v10, %v1812_v10  ;;  %v726_v26 = vsub.f32 %v694_v18, %v710_v55 }
 0x1ee   : > { %v602_v27 = vpop.xlane.xlu0 %601  ;;  %v604_v28 = vpop.xlane.xlu1 %603 }
 0x1ef   : > { %1315 = vrsqrt.f32 %v773_v19  ;;  %v718_v31 = vsub.f32 %v686_v23, %v702_v25  ;;  %v742_v34 = vmax.f32 %v726_v26, 0.0  ;;  %v749_v25 = vsub.f32 %v1710_v44, %v1794_v41 }
 0x1f0   : > { %v1306_v38 = vpop.eup %1305  ;;  %v1851_v44 = vmul.f32 0.03125, %v604_v28 }
 0x1f1   : > { %v799_v40 = vmul.f32 %v1306_v38, %v751_v29  ;;  %v734_v30 = vmax.f32 %v718_v31, 0.0  ;;  %v774_v48 = vadd.f32 1e-12, %v742_v34  ;;  %v760_v29 = vsub.f32 %v1718_v47, %v1798_v56 }
 0x1f2   : > { %v1830_v51 = vpop.xlane.xlu0 %617  ;;  %v1832_v52 = vpop.xlane.xlu1 %619 }
 0x1f3   : > { %v837_v32 = vmul.f32 %v1826_v39, %v799_v40  ;;  %v766_v53 = vadd.f32 1e-12, %v734_v30  ;;  %1317 = vrsqrt.f32 %v774_v48  ;;  %v1849_v30 = vmul.f32 0.03125, %v602_v27 }
 0x1f4   : > { %v1308_v55 = vpop.eup %1307  ;;  %v757_v48 = vsub.f32 %v1712_v45, %v1802_v14  ;;  %v758_v27 = vsub.f32 %v1724_v49, %v1806_v36  ;;  %v708_v45 = vmul.f32 %v1851_v44, %v1851_v44 }
 0x1f5   : > { %v1310_v35 = vpop.eup %1309  ;;  %v859_v5 = vadd.f32 %v1828_v50, %v837_v32  ;;  %v807_v9 = vmul.f32 %v1308_v55, %v759_v42  ;;  %1319 = vrsqrt.f32 %v766_v53 }
 0x1f6   : > { %v800_v18 = vmul.f32 %v1310_v35, %v752_v58  ;;  %v598_v19 = vpop.xlane.xlu0 %597  ;;  %v600_v23 = vpop.xlane.xlu1 %599 }
 0x1f7   : > { %v875_v43 = vadd.f32 %v859_v5, %v1692_v20  ;;  %v845_v33 = vmul.f32 %v1826_v39, %v807_v9  ;;  %v1867_v14 = vmul.f32 0.03125, %v598_v19 }
 0x1f8   : > { %v1312_v26 = vpop.eup %1311  ;;  %v838_v46 = vmul.f32 %v1826_v39, %v800_v18 }
 0x1f9   : > { %v1314_v37 = vpop.eup %1313  ;;  %891 = vst [vmem:[#allocation2 + $0x10] sm:$0xff] %v875_v43  ;;  %v867_v31 = vadd.f32 %v1828_v50, %v845_v33  ;;  %v797_v34 = vmul.f32 %v1312_v26, %v749_v25  ;;  %v750_v43 = vsub.f32 %v1735_v54, %v1812_v10  ;;  %v1874_v33 = vmul.f32 0.03125, %v600_v23 }
 0x1fa   : > { %v860_v38 = vadd.f32 %v1828_v50, %v838_v46  ;;  %v808_v40 = vmul.f32 %v1314_v37, %v760_v29  ;;  %v614_v20 = vpop.xlane.xlu0 %613  ;;  %v616_v41 = vpop.xlane.xlu1 %615  ;;  %v705_v54 = vmul.f32 %v1867_v14, %v1867_v14 }
 0x1fb   : > { %v883_v47 = vadd.f32 %v867_v31, %v1666_v7  ;;  %v835_v56 = vmul.f32 %v1826_v39, %v797_v34  ;;  %v707_v7 = vmul.f32 %v1849_v30, %v1849_v30  ;;  %v1876_v26 = vmul.f32 0.03125, %v614_v20 }
 0x1fc   : > { %v1316_v42 = vpop.eup %1315  ;;  %v876_v32 = vadd.f32 %v860_v38, %v1694_v21  ;;  %v846_v53 = vmul.f32 %v1826_v39, %v808_v40  ;;  %v1880_v31 = vmul.f32 0.03125, %v1830_v51  ;;  %v1887_v10 = vmul.f32 0.03125, %v616_v41 }
 0x1fd   : > { %899 = vst [vmem:[#allocation2 + $0x50] sm:$0xff] %v883_v47  ;;  %v857_v28 = vadd.f32 %v1828_v50, %v835_v56  ;;  %v805_v55 = vmul.f32 %v1316_v42, %v757_v48  ;;  %v706_v51 = vmul.f32 %v1874_v33, %v1874_v33 }
 0x1fe   : > { %892 = vst [vmem:[#allocation2 + $0x18] sm:$0xff] %v876_v32  ;;  %v868_v58 = vadd.f32 %v1828_v50, %v846_v53  ;;  %v666_v21 = vpop.xlane.xlu0 %665  ;;  %v668_v35 = vpop.xlane.xlu1 %667  ;;  %v713_v32 = vmul.f32 %v1876_v26, %v1876_v26 }
 0x1ff   : > { %v873_v5 = vadd.f32 %v857_v28, %v1696_v22  ;;  %v843_v49 = vmul.f32 %v1826_v39, %v805_v55  ;;  %v691_v36 = vmul.f32 0.03125, %v666_v21  ;;  %v692_v9 = vmul.f32 0.03125, %v668_v35 }
 0x200   : > { %v1318_v18 = vpop.eup %1317  ;;  %v884_v25 = vadd.f32 %v868_v58, %v1668_v8  ;;  %v1883_v8 = vmul.f32 0.03125, %v1832_v52 }
 0x201   : > { %889 = vst [vmem:[#allocation2] sm:$0xff] %v873_v5  ;;  %v865_v19 = vadd.f32 %v1828_v50, %v843_v49  ;;  %v806_v29 = vmul.f32 %v1318_v18, %v758_v27  ;;  %v723_v46 = vsub.f32 %v691_v36, %v707_v7  ;;  %v724_v22 = vsub.f32 %v692_v9, %v708_v45 }
 0x202   : > { %v1320_v37 = vpop.eup %1319  ;;  %900 = vst [vmem:[#allocation2 + $0x58] sm:$0xff] %v884_v25  ;;  %v662_v23 = vpop.xlane.xlu0 %661  ;;  %v715_v25 = vmul.f32 %v1880_v31, %v1880_v31 }
 0x203   : > { %v664_v34 = vpop.xlane.xlu1 %663  ;;  %v881_v38 = vadd.f32 %v865_v19, %v1674_v11  ;;  %v798_v40 = vmul.f32 %v1320_v37, %v750_v43  ;;  %v844_v20 = vmul.f32 %v1826_v39, %v806_v29  ;;  %v739_v48 = vmax.f32 %v723_v46, 0.0 }
 0x204   : > { %v740_v47 = vmax.f32 %v724_v22, 0.0  ;;  %v689_v56 = vmul.f32 0.03125, %v662_v23  ;;  %v690_v52 = vmul.f32 0.03125, %v664_v34  ;;  %v714_v11 = vmul.f32 %v1887_v10, %v1887_v10 }
 0x205   : > { %897 = vst [vmem:[#allocation2 + $0x40] sm:$0xff] %v881_v38  ;;  %v836_v42 = vmul.f32 %v1826_v39, %v798_v40  ;;  %v866_v41 = vadd.f32 %v1828_v50, %v844_v20  ;;  %v771_v53 = vadd.f32 1e-12, %v739_v48 }
 0x206   : > { %v772_v27 = vadd.f32 1e-12, %v740_v47  ;;  %v721_v28 = vsub.f32 %v689_v56, %v705_v54  ;;  %v722_v55 = vsub.f32 %v690_v52, %v706_v51  ;;  %v678_v58 = vpop.xlane.xlu0 %677  ;;  %v755_v52 = vsub.f32 %v1741_v57, %v1849_v30 }
 0x207   : > { %v680_v7 = vpop.xlane.xlu1 %679  ;;  %v858_v45 = vadd.f32 %v1828_v50, %v836_v42  ;;  %v882_v21 = vadd.f32 %v866_v41, %v1676_v12  ;;  %1321 = vrsqrt.f32 %v771_v53  ;;  %v697_v35 = vmul.f32 0.03125, %v678_v58 }
 0x208   : > { %1323 = vrsqrt.f32 %v772_v27  ;;  %v737_v5 = vmax.f32 %v721_v28, 0.0  ;;  %v738_v49 = vmax.f32 %v722_v55, 0.0  ;;  %v698_v36 = vmul.f32 0.03125, %v680_v7 }
 0x209   : > { %v874_v9 = vadd.f32 %v858_v45, %v1700_v24  ;;  %898 = vst [vmem:[#allocation2 + $0x48] sm:$0xff] %v882_v21  ;;  %v729_v18 = vsub.f32 %v697_v35, %v713_v32  ;;  %v716_v12 = vmul.f32 %v1883_v8, %v1883_v8  ;;  %v756_v41 = vsub.f32 %v1750_v61, %v1851_v44 }
 0x20a   : > { %v769_v43 = vadd.f32 1e-12, %v737_v5  ;;  %v770_v19 = vadd.f32 1e-12, %v738_v49  ;;  %v730_v29 = vsub.f32 %v698_v36, %v714_v11  ;;  %v682_v46 = vpop.xlane.xlu0 %681  ;;  %v753_v28 = vsub.f32 %v1745_v59, %v1867_v14 }
 0x20b   : > { %v684_v22 = vpop.xlane.xlu1 %683  ;;  %890 = vst [vmem:[#allocation2 + $0x8] sm:$0xff] %v874_v9  ;;  %v745_v37 = vmax.f32 %v729_v18, 0.0  ;;  %v699_v54 = vmul.f32 0.03125, %v682_v46  ;;  %v754_v57 = vsub.f32 %v1760_v0, %v1874_v33  ;;  %v761_v45 = vsub.f32 %v1752_v62, %v1876_v26 }
 0x20c   : > { %v700_v23 = vmul.f32 0.03125, %v684_v22  ;;  %1325 = vrsqrt.f32 %v769_v43  ;;  %v746_v34 = vmax.f32 %v730_v29, 0.0  ;;  %v762_v59 = vsub.f32 %v1764_v1, %v1887_v10 }
 0x20d   : > { %1327 = vrsqrt.f32 %v770_v19  ;;  %v777_v24 = vadd.f32 1e-12, %v745_v37  ;;  %v731_v38 = vsub.f32 %v699_v54, %v715_v25 }
 0x20e   : > { %v732_v40 = vsub.f32 %v700_v23, %v716_v12  ;;  %v778_v20 = vadd.f32 1e-12, %v746_v34 }
 0x20f   : > { %1329 = vrsqrt.f32 %v777_v24  ;;  %v747_v48 = vmax.f32 %v731_v38, 0.0 }
 0x210   : > { %v748_v51 = vmax.f32 %v732_v40, 0.0  ;;  %1331 = vrsqrt.f32 %v778_v20 }
 0x211   : > { %v779_v47 = vadd.f32 1e-12, %v747_v48 }
 0x212   : > { %v780_v56 = vadd.f32 1e-12, %v748_v51 }
 0x213   : > { %1333 = vrsqrt.f32 %v779_v47 }
 0x214   : > { %v1322_v42 = vpop.eup %1321  ;;  %1335 = vrsqrt.f32 %v780_v56 }
 0x215   : > { %v1324_v32 = vpop.eup %1323  ;;  %v803_v53 = vmul.f32 %v1322_v42, %v755_v52 }
 0x216   : > { %v804_v11 = vmul.f32 %v1324_v32, %v756_v41 }
 0x217   : > { %v841_v27 = vmul.f32 %v1826_v39, %v803_v53 }
 0x218   : > { %v842_v55 = vmul.f32 %v1826_v39, %v804_v11 }
 0x219   : > { %v1326_v58 = vpop.eup %1325  ;;  %v863_v30 = vadd.f32 %v1828_v50, %v841_v27 }
 0x21a   : > { %v1328_v7 = vpop.eup %1327  ;;  %v864_v61 = vadd.f32 %v1828_v50, %v842_v55  ;;  %v801_v44 = vmul.f32 %v1326_v58, %v753_v28 }
 0x21b   : > { %v879_v21 = vadd.f32 %v863_v30, %v1678_v13  ;;  %v802_v35 = vmul.f32 %v1328_v7, %v754_v57  ;;  %v763_v13 = vsub.f32 %v1747_v60, %v1880_v31 }
 0x21c   : > { %v1330_v5 = vpop.eup %1329  ;;  %v880_v14 = vadd.f32 %v864_v61, %v1682_v15  ;;  %v839_v0 = vmul.f32 %v1826_v39, %v801_v44  ;;  %v764_v15 = vsub.f32 %v1756_v63, %v1883_v8 }
 0x21d   : > { %v1332_v33 = vpop.eup %1331  ;;  %895 = vst [vmem:[#allocation2 + $0x30] sm:$0xff] %v879_v21  ;;  %v840_v49 = vmul.f32 %v1826_v39, %v802_v35  ;;  %v809_v36 = vmul.f32 %v1330_v5, %v761_v45 }
 0x21e   : > { %896 = vst [vmem:[#allocation2 + $0x38] sm:$0xff] %v880_v14  ;;  %v861_v9 = vadd.f32 %v1828_v50, %v839_v0  ;;  %v810_v62 = vmul.f32 %v1332_v33, %v762_v59 }
 0x21f   : > { %v862_v26 = vadd.f32 %v1828_v50, %v840_v49  ;;  %v847_v1 = vmul.f32 %v1826_v39, %v809_v36 }
 0x220   : > { %v1334_v10 = vpop.eup %1333  ;;  %v877_v18 = vadd.f32 %v861_v9, %v1684_v16  ;;  %v848_v25 = vmul.f32 %v1826_v39, %v810_v62 }
 0x221   : > { %v1336_v43 = vpop.eup %1335  ;;  %v878_v19 = vadd.f32 %v862_v26, %v1686_v17  ;;  %v869_v29 = vadd.f32 %v1828_v50, %v847_v1  ;;  %v811_v46 = vmul.f32 %v1334_v10, %v763_v13 }
 0x222   : > { %893 = vst [vmem:[#allocation2 + $0x20] sm:$0xff] %v877_v18  ;;  %v870_v60 = vadd.f32 %v1828_v50, %v848_v25  ;;  %v812_v31 = vmul.f32 %v1336_v43, %v764_v15 }
 0x223   : > { %894 = vst [vmem:[#allocation2 + $0x28] sm:$0xff] %v878_v19  ;;  %v885_v22 = vadd.f32 %v869_v29, %v1660_v4  ;;  %v849_v12 = vmul.f32 %v1826_v39, %v811_v46 }
 0x224   : > { %v886_v63 = vadd.f32 %v870_v60, %v1664_v6  ;;  %v850_v16 = vmul.f32 %v1826_v39, %v812_v31 }
 0x225   : > { %901 = vst [vmem:[#allocation2 + $0x60] sm:$0xff] %v885_v22  ;;  %v871_v8 = vadd.f32 %v1828_v50, %v849_v12 }
 0x226   : > { %902 = vst [vmem:[#allocation2 + $0x68] sm:$0xff] %v886_v63  ;;  %v872_v17 = vadd.f32 %v1828_v50, %v850_v16  ;;  %908 = sbr.rel (%p1065_p1) target bundleno = 557 (0x22d), region = 52 }
 0x227   : > { %v887_v37 = vadd.f32 %v871_v8, %v1656_v2 }
 0x228   : > { %v888_v54 = vadd.f32 %v872_v17, %v1658_v3 }
 0x229   : > { %903 = vst [vmem:[#allocation2 + $0x70] sm:$0xff] %v887_v37 }
 0x22a   : > { %904 = vst [vmem:[#allocation2 + $0x78] sm:$0xff] %v888_v54 }
 0x22b   : > { %v909_v4 = vld [vmem:[#allocation2] sm:$0xff]  ;;  %vm910_vm1 = vcmask 261120  }
 0x22c   : > { %911 = vst.msk [vmem:[%s1652_s1] sm:$0xff] %vm910_vm1, %v909_v4 }
 0x22d PF: > { %s1067_s30 = sshll.u32 %s1479_s19, 7  ;;  %s926_s23 = sshll.u32 %s1652_s1, 4  ;;  %s927_s23 = int_to_ptr.vmem [resolvable:$true] %s926_s23 }
 0x22e   : > { %s924_s24 = scalar_lea.hbm %s1998_s4, %s1067_s30  ;;  %s913_s7 = scalar_lea.sflag [#allocation6], %s1640_s13 }
 0x22f   : > { %s1391_s8 = scalar_lea.vmem %s927_s23, 128  ;;  %s1498_s18 = smov [#allocation9]  }
 0x230   : > { %p1392_p12 = scmp.ne.s32.totalorder %s927_s23, %s1391_s8  ;;  %s1395_s25 = sshll.u32 %s1498_s18, 4  ;;  %s1396_s25 = int_to_ptr.vmem [resolvable:$false] %s1395_s25 }
 0x231   : > { %s1397_s27 = scalar_lea.vmem %s1396_s25, 256  ;;  %p1398_p3 = scmp.lt.s32.totalorder %s927_s23, %s1396_s25 }
 0x232   : > { %p1393_p2 = pnand %p1392_p12, %p1610_p9  ;;  %p1399_p5 = scmp.lt.s32.totalorder %s1397_s27, %s1391_s8 }
 0x234   : > { %p1394_p0 = pneg %p1393_p2  ;;  %p1400_p4 = por %p1399_p5, %p1398_p3 }
 0x236   : > { %p1401_p6 = pnand %p1400_p4, %p1394_p0 }
 0x238   : > { %1404 = shalt.err (!%p1401_p6)
}
 0x239   : > { %s1405_s19 = scalar_lea.hbm %s924_s24, 128  ;;  %s1409_s29 = scalar_lea.hbm %s1998_s4, 256 }
 0x23a   : > { %p1406_p7 = scmp.ne.s32.totalorder %s924_s24, %s1405_s19  ;;  %p1410_p10 = scmp.lt.s32.totalorder %s924_s24, %s1998_s4 }
 0x23b   : > { %p1411_p8 = scmp.lt.s32.totalorder %s1409_s29, %s1405_s19 }
 0x23c   : > { %p1407_p11 = pnand %p1406_p7, %p1610_p9 }
 0x23d   : > { %p1412_p1 = por %p1411_p8, %p1410_p10 }
 0x23e   : > { %p1408_p13 = pneg %p1407_p11 }
 0x240   : > { %p1413_p12 = pnand %p1412_p1, %p1408_p13 }
 0x242   : > { %1416 = shalt.err (!%p1413_p12)
}
 0x243   : > { %1203 = dma.vmem_to_hbm [thread:$0]  (%p1610_p9), %s927_s23, 128, %s924_s24, %s913_s7  }
 0x244 PF: > { %p1220_p2 = scmp.ge.s32.totalorder %s1491_s22, 2  ;;  %s938_s9 = sand.u32 1, %s1463_s15  }
 0x245   : > { %p2011_p0 = scmp.ne.s32.totalorder %s2004_s28, 0  ;;  %s939_s30 = scalar_lea.sflag [#allocation6], %s938_s9 }
 0x247   : > { %p1214_p3 = pnand %p1220_p2, %p2011_p0 }
 0x249   : > { %p1215_p5 = pneg %p1214_p3 }
 0x24b   : > { %1458 = dma.done.wait (%p1215_p5), %s939_s30, 128  }
 0x24c   : > { %1460 = vsyncadd (%p1215_p5), %s939_s30, 4294967168  ;;  %s21_s22 = sadd.s32 1, %s1491_s22   ;;  %s2012_s14 = sld [smem:[#allocation13_spill]] }
 0x24d   : > { %p18_p4 = scmp.ge.s32.totalorder %s21_s22, 6   ;;  %s2013_s15 = smov %s1467_s16 }
 0x24e   : > { %s2014_s16 = smov %s1471_s17  ;;  %s2015_s17 = smov %s1625_s10 }
 0x24f   : > { %s2016_s18 = smov %s1483_s20  ;;  %s2017_s19 = smov %s1487_s21 }
 0x250   : > { %s2019_s21 = smov %s2025_s12  ;;  %20 = sbr.rel (!%p18_p4) target bundleno = 10 (0xa), region = 95 }
 0x252   : > { %s2018_s20 = smov %s2012_s14 }
 0x255   :  { %944 = vsyncpa [#allocation5], 1 }
 0x256   :  { %946 = vsyncpa [#allocation5 + $0x1], 1 }
 0x257   :  { %947 = vsyncpa [#allocation8], 1 }
 0x258   :  { %948 = vsyncpa [#allocation6], 1 }
 0x259   :  { %950 = vsyncpa [#allocation6 + $0x1], 1 }

</bundles_post_ra>
